<compile_context>
chip_gen: v7x
topology: tpu7x:2x2x1
jax: 0.10.0
libtpu: 0.0.40
codegen_flags: <defaults>
</compile_context>

<pallas_src>
import functools

import jax
import jax.numpy as jnp
from jax.experimental import pallas as pl
from jax.experimental.pallas import tpu as pltpu


def _round_up(x, m):
    return (x + m - 1) // m * m


# ---------------------------------------------------------------------------
# Kernel 1: streaming patch-embed matmul, tiled over the B*S row axis.
# ---------------------------------------------------------------------------
def patch_embed_kernel(patches_ref, w_ref, b_ref, hidden_ref):
    # patches_ref : (TM, P)   row tile of flattened patches (compute_dtype)
    # w_ref       : (P, Hp)   patch-embedding weight, resident (Buffered(1))
    # b_ref       : (1, Hp)   patch-embedding bias  (fp32), resident
    # hidden_ref  : (TM, Hp)  output tile of last_hidden_state (hidden_dtype)
    acc = jnp.dot(patches_ref[...], w_ref[...],
                  preferred_element_type=jnp.float32)
    hidden_ref[...] = (acc + b_ref[...]).astype(hidden_ref.dtype)


# ---------------------------------------------------------------------------
# Kernel 2: head — pooled = mean_S(hidden), logits = pooled @ W_cls^T + b_cls.
#           Gridded over batch; classifier kept fully fp32.
# ---------------------------------------------------------------------------
def head_kernel(hidden_ref, w_clsT_ref, b_cls_ref, logits_ref):
    # hidden_ref : (1, S, Hp)   one batch row of last_hidden_state
    # w_clsT_ref : (Hp, Lp)     classifier weight^T (fp32), resident
    # b_cls_ref  : (1, Lp)      classifier bias (fp32), resident
    # logits_ref : (1, 1, Lp)   output logits (fp32)
    h = hidden_ref[0].astype(jnp.float32)               # (S, Hp)
    pooled = jnp.mean(h, axis=0, keepdims=True)         # (1, Hp)
    logits = jnp.dot(pooled, w_clsT_ref[...],
                     preferred_element_type=jnp.float32) + b_cls_ref[...]
    logits_ref[0] = logits


# ---------------------------------------------------------------------------
# Host wrapper
# ---------------------------------------------------------------------------
def mae_wrapper_forward(x_nchw, w_emb, b_emb, w_cls, b_cls, patch_size,
                        tile_m=512, compute_dtype=jnp.bfloat16,
                        hidden_dtype=None):
    """Fused MAEWrapper forward. Returns (last_hidden_state, logits)."""
    if hidden_dtype is None:
        hidden_dtype = compute_dtype

    B, C, Himg, Wimg = x_nchw.shape
    p = patch_size
    gh, gw = Himg // p, Wimg // p
    S = gh * gw
    P = C * p * p
    H = w_emb.shape[1]
    L = w_cls.shape[0]

    Hp = _round_up(H, 128)          # lane-dense hidden width
    Lp = _round_up(L, 128)          # lane-dense logits width

    # -- host-side glue: unfold NCHW image into flattened patches (BS, P).
    #    The bf16 cast is applied immediately so XLA fuses it into the same
    #    transpose pass (no extra HBM round-trip).
    patches = x_nchw.reshape(B, C, gh, p, gw, p)
    patches = patches.transpose(0, 2, 4, 1, 3, 5).reshape(B * S, P)
    patches_c = patches.astype(compute_dtype)

    # -- one-time weight prep: pad to 128 lanes, pre-transpose classifier.
    w_emb_c = jnp.zeros((P, Hp), compute_dtype).at[:, :H].set(
        w_emb.astype(compute_dtype))
    b_emb_p = jnp.zeros((1, Hp), jnp.float32).at[:, :H].set(
        b_emb.astype(jnp.float32).reshape(1, H))
    w_clsT_p = jnp.zeros((Hp, Lp), jnp.float32).at[:H, :L].set(
        w_cls.astype(jnp.float32).T)                 # fp32: head stays fp32
    b_cls_p = jnp.zeros((1, Lp), jnp.float32).at[:, :L].set(
        b_cls.astype(jnp.float32).reshape(1, L))

    # -- row tiling over B*S (no host-side pad: ragged edge block is masked).
    BS = B * S
    TM = min(tile_m, max(8, _round_up(BS, 8)))       # 8-sublane granular
    grid_m = pl.cdiv(BS, TM)

    in_bytes = jnp.dtype(compute_dtype).itemsize
    out_bytes = jnp.dtype(hidden_dtype).itemsize
    # VMEM footprint: 2x streamed row tiles, 1x resident weight (Buffered(1)),
    # resident bias, 2x output tiles, + slack.
    # NOTE: on v7x (64 MiB VMEM / TensorCore) lower tile_m if this exceeds
    #       ~24-28 MiB; on v5e/v6e bf16 + TM=512 is well inside budget.
    vmem_bytes = (2 * TM * P * in_bytes
                  + P * Hp * in_bytes
                  + 8 * Hp * 4
                  + 2 * TM * Hp * out_bytes
                  + (4 << 20))
    vmem_bytes = min(int(vmem_bytes), 60 << 20)

    hidden_p = pl.pallas_call(
        patch_embed_kernel,
        out_shape=jax.ShapeDtypeStruct((BS, Hp), hidden_dtype),
        grid_spec=pltpu.PrefetchScalarGridSpec(
            num_scalar_prefetch=0,
            grid=(grid_m,),
            in_specs=[
                pl.BlockSpec((TM, P), lambda i: (i, 0)),            # streamed
                pl.BlockSpec((P, Hp), lambda i: (0, 0),
                             pipeline_mode=pl.Buffered(1)),          # resident
                pl.BlockSpec((1, Hp), lambda i: (0, 0),
                             pipeline_mode=pl.Buffered(1)),          # resident
            ],
            out_specs=pl.BlockSpec((TM, Hp), lambda i: (i, 0)),
        ),
        compiler_params=pltpu.CompilerParams(
            dimension_semantics=("parallel",),    # megacore / 2-TC shardable
            vmem_limit_bytes=vmem_bytes),
    )(patches_c, w_emb_c, b_emb_p)

    # Column slice is a no-op when H is already a multiple of 128 (real ViT).
    last_hidden_state = hidden_p[:, :H].reshape(B, S, H)

    # -- head: pool the hidden output (not the patches) and classify in fp32.
    hidden_3d = hidden_p.reshape(B, S, Hp)            # free row-major reshape
    logits_3d = pl.pallas_call(
        head_kernel,
        out_shape=jax.ShapeDtypeStruct((B, 1, Lp), jnp.float32),
        grid_spec=pltpu.PrefetchScalarGridSpec(
            num_scalar_prefetch=0,
            grid=(B,),
            in_specs=[
                pl.BlockSpec((1, S, Hp), lambda b: (b, 0, 0)),
                pl.BlockSpec((Hp, Lp), lambda b: (0, 0),
                             pipeline_mode=pl.Buffered(1)),
                pl.BlockSpec((1, Lp), lambda b: (0, 0),
                             pipeline_mode=pl.Buffered(1)),
            ],
            out_specs=pl.BlockSpec((1, 1, Lp), lambda b: (b, 0, 0)),
        ),
        compiler_params=pltpu.CompilerParams(
            dimension_semantics=("parallel",)),
    )(hidden_3d, w_clsT_p, b_cls_p)

    logits = logits_3d[:, 0, :L]
    return last_hidden_state, logits


# ---------------------------------------------------------------------------
# Pure-JAX reference (for correctness check)
# ---------------------------------------------------------------------------
def reference_forward(x_nchw, w_emb, b_emb, w_cls, b_cls, patch_size):
    B, C, Himg, Wimg = x_nchw.shape
    p = patch_size
    gh, gw = Himg // p, Wimg // p
    patches = x_nchw.reshape(B, C, gh, p, gw, p)
    patches = patches.transpose(0, 2, 4, 1, 3, 5).reshape(B, gh * gw, C * p * p)
    hidden = jnp.einsum("bsp,ph->bsh", patches, w_emb) + b_emb[0]
    pooled = hidden.mean(axis=1)
    logits = pooled @ w_cls.T + b_cls[0]
    return hidden, logits


if __name__ == "__main__":
    # Small shapes consistent with the module:
    #   image  [B=2, C=4, 16, 16], patch_size=8 -> S=4 patches, P=256
    #   hidden_size H=32, num_labels L=10
    B, C, IMG, PATCH = 2, 4, 16, 8
    HIDDEN, NUM_LABELS = 32, 10
    P = C * PATCH * PATCH
    S = (IMG // PATCH) ** 2

    key = jax.random.PRNGKey(0)
    kx, kw1, kb1, kw2, kb2 = jax.random.split(key, 5)

    x = jax.random.normal(kx, (B, C, IMG, IMG), dtype=jnp.float32)
    w_emb = jax.random.normal(kw1, (P, HIDDEN), dtype=jnp.float32) * 0.02
    b_emb = jax.random.normal(kb1, (1, HIDDEN), dtype=jnp.float32) * 0.02
    w_cls = jax.random.normal(kw2, (NUM_LABELS, HIDDEN), dtype=jnp.float32) * 0.02
    b_cls = jax.random.normal(kb2, (1, NUM_LABELS), dtype=jnp.float32) * 0.02

    ref_hidden, ref_logits = reference_forward(x, w_emb, b_emb, w_cls, b_cls, PATCH)

    # Default path: bf16 compute / bf16 hidden (mem-bound kernel at half bytes).
    fwd_bf16 = jax.jit(functools.partial(mae_wrapper_forward, patch_size=PATCH))
    hid_bf16, log_bf16 = fwd_bf16(x, w_emb, b_emb, w_cls, b_cls)
    jax.block_until_ready((hid_bf16, log_bf16))
    assert hid_bf16.shape == (B, S, HIDDEN)
    assert log_bf16.shape == (B, NUM_LABELS)
    assert jnp.allclose(hid_bf16.astype(jnp.float32), ref_hidden,
                        atol=3e-2, rtol=5e-2)
    assert jnp.allclose(log_bf16, ref_logits, atol=3e-2, rtol=5e-2)

    # fp32 path: tighter numerical check of the same kernels.
    fwd_f32 = jax.jit(functools.partial(mae_wrapper_forward, patch_size=PATCH,
                                        compute_dtype=jnp.float32))
    hid_f32, log_f32 = fwd_f32(x, w_emb, b_emb, w_cls, b_cls)
    jax.block_until_ready((hid_f32, log_f32))
    assert hid_f32.shape == (B, S, HIDDEN)
    assert log_f32.shape == (B, NUM_LABELS)
    assert jnp.allclose(hid_f32, ref_hidden, atol=2e-3, rtol=2e-3)
    assert jnp.allclose(log_f32, ref_logits, atol=2e-3, rtol=2e-3)

    print("KERNEL_OK")
</pallas_src>

<mosaic_0001>
module attributes {stable_mosaic.version = 11 : i64} {
  func.func @patch_embed_kernel(%arg0: i32, %arg1: memref<8x256xbf16, #tpu.memory_space<vmem>>, %arg2: memref<256x128xbf16, #tpu.memory_space<vmem>>, %arg3: memref<1x128xf32, #tpu.memory_space<vmem>>, %arg4: memref<8x128xbf16, #tpu.memory_space<vmem>>) attributes {dimension_semantics = [#tpu.dimension_semantics<parallel>], iteration_bounds = array<i64: 1>, scalar_prefetch = 0 : i64, scratch_operands = 0 : i64, tpu.core_type = #tpu.core_type<tc>, window_params = [{transform_indices = @transform_0, window_bounds = array<i64: 8, 256>}, {pipeline_mode = #tpu.pipeline_mode<synchronous>, transform_indices = @transform_1, window_bounds = array<i64: 256, 128>}, {pipeline_mode = #tpu.pipeline_mode<synchronous>, transform_indices = @transform_2, window_bounds = array<i64: 1, 128>}, {transform_indices = @transform_3, window_bounds = array<i64: 8, 128>}]} {
    %c0 = arith.constant 0 : index
    %c0_0 = arith.constant 0 : index
    %0 = vector.load %arg1[%c0, %c0_0] : memref<8x256xbf16, #tpu.memory_space<vmem>>, vector<8x256xbf16>
    %c0_1 = arith.constant 0 : index
    %c0_2 = arith.constant 0 : index
    %1 = vector.load %arg2[%c0_1, %c0_2] : memref<256x128xbf16, #tpu.memory_space<vmem>>, vector<256x128xbf16>
    %cst = arith.constant dense<0.000000e+00> : vector<8x128xf32>
    %2 = tpu.matmul %0, %1, %cst {dimension_numbers = #tpu.dot_dimension_numbers<[1], [0], [0], [1], [0, 0, 1, 1], [], []>} : vector<8x256xbf16>, vector<256x128xbf16>, vector<8x128xf32> -> vector<8x128xf32>
    %c0_3 = arith.constant 0 : index
    %c0_4 = arith.constant 0 : index
    %3 = vector.load %arg3[%c0_3, %c0_4] : memref<1x128xf32, #tpu.memory_space<vmem>>, vector<1x128xf32>
    %4 = vector.broadcast %3 : vector<1x128xf32> to vector<8x128xf32>
    %5 = arith.addf %2, %4 : vector<8x128xf32>
    %6 = arith.truncf %5 : vector<8x128xf32> to vector<8x128xbf16>
    %c0_5 = arith.constant 0 : index
    %c0_6 = arith.constant 0 : index
    %7 = vector.load %arg4[%c0_5, %c0_6] : memref<8x128xbf16, #tpu.memory_space<vmem>>, vector<8x128xbf16>
    tpu.vector_store %arg4[%c0_5, %c0_6], %6 {strides = array<i32>} : memref<8x128xbf16, #tpu.memory_space<vmem>>, vector<8x128xbf16>,
    return
  }
  func.func @transform_0(%arg0: i32) -> (i32, i32) {
    %c0_i32 = arith.constant 0 : i32
    %c0_i32_0 = arith.constant 0 : i32
    return %arg0, %c0_i32 : i32, i32
  }
  func.func @transform_1(%arg0: i32) -> (i32, i32) {
    %c0_i32 = arith.constant 0 : i32
    %c0_i32_0 = arith.constant 0 : i32
    %c0_i32_1 = arith.constant 0 : i32
    return %c0_i32, %c0_i32_0 : i32, i32
  }
  func.func @transform_2(%arg0: i32) -> (i32, i32) {
    %c0_i32 = arith.constant 0 : i32
    %c0_i32_0 = arith.constant 0 : i32
    %c0_i32_1 = arith.constant 0 : i32
    return %c0_i32, %c0_i32_0 : i32, i32
  }
  func.func @transform_3(%arg0: i32) -> (i32, i32) {
    %c0_i32 = arith.constant 0 : i32
    %c0_i32_0 = arith.constant 0 : i32
    return %arg0, %c0_i32 : i32, i32
  }
}

module attributes {stable_mosaic.version = 11 : i64} {
  func.func @head_kernel(%arg0: i32, %arg1: memref<1x4x128xbf16, #tpu.memory_space<vmem>>, %arg2: memref<128x128xf32, #tpu.memory_space<vmem>>, %arg3: memref<1x128xf32, #tpu.memory_space<vmem>>, %arg4: memref<1x1x128xf32, #tpu.memory_space<vmem>>) attributes {dimension_semantics = [#tpu.dimension_semantics<parallel>], iteration_bounds = array<i64: 2>, scalar_prefetch = 0 : i64, scratch_operands = 0 : i64, tpu.core_type = #tpu.core_type<tc>, window_params = [{transform_indices = @transform_0, window_bounds = array<i64: 1, 4, 128>}, {pipeline_mode = #tpu.pipeline_mode<synchronous>, transform_indices = @transform_1, window_bounds = array<i64: 128, 128>}, {pipeline_mode = #tpu.pipeline_mode<synchronous>, transform_indices = @transform_2, window_bounds = array<i64: 1, 128>}, {transform_indices = @transform_3, window_bounds = array<i64: 1, 1, 128>}]} {
    %c0 = arith.constant 0 : index
    %c0_0 = arith.constant 0 : index
    %c0_1 = arith.constant 0 : index
    %0 = vector.load %arg1[%c0, %c0_0, %c0_1] : memref<1x4x128xbf16, #tpu.memory_space<vmem>>, vector<1x4x128xbf16>
    %1 = vector.shape_cast %0 : vector<1x4x128xbf16> to vector<4x128xbf16>
    %2 = arith.extf %1 : vector<4x128xbf16> to vector<4x128xf32>
    %cst = arith.constant dense<0.000000e+00> : vector<128xf32>
    %3 = vector.multi_reduction <add>, %2, %cst [0] : vector<4x128xf32> to vector<128xf32>
    %4 = vector.shape_cast %3 : vector<128xf32> to vector<1x128xf32>
    %cst_2 = arith.constant 4.000000e+00 : f32
    %5 = vector.broadcast %cst_2 : f32 to vector<1x128xf32>
    %6 = arith.divf %4, %5 : vector<1x128xf32>
    %c0_3 = arith.constant 0 : index
    %c0_4 = arith.constant 0 : index
    %7 = vector.load %arg2[%c0_3, %c0_4] : memref<128x128xf32, #tpu.memory_space<vmem>>, vector<128x128xf32>
    %cst_5 = arith.constant dense<0.000000e+00> : vector<1x128xf32>
    %8 = tpu.matmul %6, %7, %cst_5 {dimension_numbers = #tpu.dot_dimension_numbers<[1], [0], [0], [1], [0, 0, 1, 1], [], []>} : vector<1x128xf32>, vector<128x128xf32>, vector<1x128xf32> -> vector<1x128xf32>
    %c0_6 = arith.constant 0 : index
    %c0_7 = arith.constant 0 : index
    %9 = vector.load %arg3[%c0_6, %c0_7] : memref<1x128xf32, #tpu.memory_space<vmem>>, vector<1x128xf32>
    %10 = arith.addf %8, %9 : vector<1x128xf32>
    %c0_8 = arith.constant 0 : index
    %c0_9 = arith.constant 0 : index
    %c0_10 = arith.constant 0 : index
    %11 = vector.load %arg4[%c0_8, %c0_9, %c0_10] : memref<1x1x128xf32, #tpu.memory_space<vmem>>, vector<1x1x128xf32>
    %12 = vector.shape_cast %11 : vector<1x1x128xf32> to vector<1x128xf32>
    %13 = vector.shape_cast %10 : vector<1x128xf32> to vector<1x1x128xf32>
    tpu.vector_store %arg4[%c0_8, %c0_9, %c0_10], %13 {strides = array<i32>} : memref<1x1x128xf32, #tpu.memory_space<vmem>>, vector<1x1x128xf32>,
    return
  }
  func.func @transform_0(%arg0: i32) -> (i32, i32, i32) {
    %c0_i32 = arith.constant 0 : i32
    %c0_i32_0 = arith.constant 0 : i32
    %c0_i32_1 = arith.constant 0 : i32
    return %arg0, %c0_i32, %c0_i32_0 : i32, i32, i32
  }
  func.func @transform_1(%arg0: i32) -> (i32, i32) {
    %c0_i32 = arith.constant 0 : i32
    %c0_i32_0 = arith.constant 0 : i32
    %c0_i32_1 = arith.constant 0 : i32
    return %c0_i32, %c0_i32_0 : i32, i32
  }
  func.func @transform_2(%arg0: i32) -> (i32, i32) {
    %c0_i32 = arith.constant 0 : i32
    %c0_i32_0 = arith.constant 0 : i32
    %c0_i32_1 = arith.constant 0 : i32
    return %c0_i32, %c0_i32_0 : i32, i32
  }
  func.func @transform_3(%arg0: i32) -> (i32, i32, i32) {
    %c0_i32 = arith.constant 0 : i32
    %c0_i32_0 = arith.constant 0 : i32
    %c0_i32_1 = arith.constant 0 : i32
    return %arg0, %c0_i32, %c0_i32_0 : i32, i32, i32
  }
}

</mosaic_0001>

<bundles_post_ra>
// kernel: mae_wrapper_forward.2
= control target key start
LH: loop header
LB: loop body
LE: loop exit
PB: predicated region body
PF: predicated region fallthrough
CT: control target
= control target key end

     0   :  { %s340_s1 = inlined_call_operand.vmem [shape: bf16[256,128], index: 1, kind: input, shape index: {}]   ;;  %s341_s0 = inlined_call_operand.vmem [shape: bf16[8,256], index: 0, kind: input, shape index: {}]   ;;  %s342_s2 = inlined_call_operand.vmem [shape: f32[1,128], index: 2, kind: input, shape index: {}]   ;;  %s343_s3 = inlined_call_operand.vmem [shape: bf16[8,128], index: 3, kind: output, shape index: {}]  }
   0x1   :  { %v245_v0 = vld [vmem:[%s340_s1 + $0x40] sm:$0xff]   ;;  %v247_v2 = vld [vmem:[%s340_s1 + $0x48] sm:$0xff]   ;;  %v249_v4 = vld [vmem:[%s340_s1 + $0x50] sm:$0xff]  }
   0x2   :  { %v246_v1 = vld [vmem:[%s340_s1] sm:$0xff]   ;;  %223 = vmatprep.subr.bf16.mxu0 %v245_v0  ;;  %v248_v3 = vld [vmem:[%s340_s1 + $0x8] sm:$0xff]   ;;  %v250_v5 = vld [vmem:[%s340_s1 + $0x10] sm:$0xff]  }
   0x3   :  { %224 = vmatpush3.bf16.msra.mxu0 %v246_v1  ;;  %v251_v6 = vld [vmem:[%s340_s1 + $0x58] sm:$0xff]   ;;  %v253_v8 = vld [vmem:[%s340_s1 + $0x60] sm:$0xff]   ;;  %v255_v10 = vld [vmem:[%s340_s1 + $0x68] sm:$0xff]  }
   0x4   :  { %225 = vmatprep.subr.bf16.mxu0 %v247_v2  ;;  %v252_v7 = vld [vmem:[%s340_s1 + $0x18] sm:$0xff]   ;;  %v254_v9 = vld [vmem:[%s340_s1 + $0x20] sm:$0xff]   ;;  %v256_v13 = vld [vmem:[%s340_s1 + $0x28] sm:$0xff]  }
   0x5   :  { %v15_v11 = vld [vmem:[%s341_s0] sm:$0xff]  ;;  %v257_v14 = vld [vmem:[%s340_s1 + $0x70] sm:$0xff]   ;;  %v259_v16 = vld [vmem:[%s340_s1 + $0x78] sm:$0xff]  }
   0x6   :  { %v206_v12 = vcombine.high %v15_v11, %v15_v11  ;;  %v258_v15 = vld [vmem:[%s340_s1 + $0x30] sm:$0xff]   ;;  %v260_v17 = vld [vmem:[%s340_s1 + $0x38] sm:$0xff]   ;;  %v205_v18 = vcombine.low %v15_v11, %v15_v11  ;;  %v204_v20 = vld [vmem:[%s342_s2] ss:$0 sm:$0xff] }
   0x7   :  { %226 = vmatpush3.bf16.msra.mxu0 %v248_v3 }
   0x8   :  { %227 = vmatprep.subr.bf16.mxu0 %v249_v4  ;;  %190 = vmatprep.mubr.bf16.mxu0 %v206_v12 }
   0xb   :  { %228 = vmatpush3.bf16.msra.mxu0 %v250_v5 }
   0xc   :  { %229 = vmatprep.subr.bf16.mxu0 %v251_v6 }
   0xf   :  { %230 = vmatpush3.bf16.msra.mxu0 %v252_v7 }
  0x10   :  { %231 = vmatprep.subr.bf16.mxu0 %v253_v8 }
  0x13   :  { %232 = vmatpush3.bf16.msra.mxu0 %v254_v9 }
  0x14   :  { %233 = vmatprep.subr.bf16.mxu0 %v255_v10 }
  0x17   :  { %234 = vmatpush3.bf16.msra.mxu0 %v256_v13 }
  0x18   :  { %235 = vmatprep.subr.bf16.mxu0 %v257_v14 }
  0x1b   :  { %236 = vmatpush3.bf16.msra.mxu0 %v258_v15 }
  0x1c   :  { %237 = vmatprep.subr.bf16.mxu0 %v259_v16 }
  0x1f   :  { %238 = vmatpush3.bf16.msra.mxu0 %v260_v17 }
  0x22   :  { %191 = vmatmul.mubr.bf16.vlgmr.msra.gmra.mrb[0].mxu0 %v205_v18 }
  0xf5   :  { %v239_v19 = vpop.f32.mrb[0].mxu0 }
  0xf6   :  { %v240_v21 = vpop.f32.mrb[1].mxu0 }
  0xf7   :  { %v241_v22 = vadd.f32 %v240_v21, %v239_v19  ;;  %v242_v23 = vpop.f32.mrb[2].mxu0 }
  0xf8   :  { %v243_v24 = vpop.f32.mrb[3].mxu0 }
  0xf9   :  { %v193_v25 = vadd.f32 %v241_v22, %v204_v20 }
  0xfb   :  { %v198_v26 = vpack.c.bf16 %v193_v25, %v193_v25 }
  0xfd   :  { %199 = vst [vmem:[%s343_s3] sm:$0xf] %v198_v26 }

// kernel: mae_wrapper_forward.3
= control target key start
LH: loop header
LB: loop body
LE: loop exit
PB: predicated region body
PF: predicated region fallthrough
CT: control target
= control target key end

     0   :  { %8 = vsyncpa [#allocation3], 0  ;;  %s698_s0 = inlined_call_operand.vmem [shape: bf16[2,4,128], index: 0, kind: input, shape index: {}]   ;;  %s699_s1 = inlined_call_operand.vmem [shape: f32[128,128], index: 1, kind: input, shape index: {}]   ;;  %s700_s2 = inlined_call_operand.vmem [shape: f32[1,128], index: 2, kind: input, shape index: {}]   ;;  %s701_s3 = inlined_call_operand.hbm [shape: f32[2,1,128], index: 3, kind: output, shape index: {}]  }
   0x1   :  { %10 = vsyncpa [#allocation3 + $0x1], 0  ;;  %s547_s12 = smov 0   ;;  %s549_s13 = smov 0  }
   0x2   :  { %s551_s14 = smov 0   ;;  %s553_s15 = smov 0  }
   0x3 LB: > { %s568_s16 = sadd.s32 4294967295, %s521_s15   ;;  %s333_s17 = sadd.s32 4294967294, %s521_s15   ;;  %s521_s15 = sphi %s553_s15, %s707_s15   ;;  %s517_s14 = sphi %s551_s14, %s706_s14   ;;  %s513_s13 = sphi %s549_s13, %s705_s13   ;;  %s509_s12 = sphi %s547_s12, %s704_s12  }
   0x4   : > { %s572_s18 = sadd.s32 1, %s521_s15   ;;  %s91_s19 = sadd.s32 1, %s517_s14 }
   0x5   : > { %s88_s20 = ssub.s32 %s521_s15, %s572_s18  ;;  %p101_p0 = scmp.ne.s32.totalorder %s517_s14, %s513_s13 }
   0x6   : > { %p89_p1 = scmp.eq.s32.totalorder %s88_s20, 0  ;;  %p102_p2 = scmp.eq.s32.totalorder %s568_s16, 1 }
   0x7   : > { %p107_p3 = scmp.ne.s32.totalorder %s513_s13, %s509_s12  ;;  %p108_p4 = scmp.eq.s32.totalorder %s333_s17, 1 }
   0x8   : > { %s583_s21 = scalar_select %p89_p1, %s517_s14, %s91_s19  }
   0x9   : > { %p585_p5 = por %p102_p2, %p101_p0  ;;  %p589_p6 = por %p108_p4, %p107_p3 }
   0xa   : > { %p336_p7 = scmp.ge.s32.totalorder %s521_s15, 1  ;;  %p139_p8 = scmp.lt.s32.totalorder %s521_s15, 3 }
   0xc   : > { %p140_p9 = pnand %p336_p7, %p139_p8 }
   0xd   : > { %v177_v0 = vld [vmem:[%s699_s1] sm:$0xff] (!%p140_p9)  ;;  %v178_v1 = vld [vmem:[%s699_s1 + $0x8] sm:$0xff] (!%p140_p9)  ;;  %v179_v2 = vld [vmem:[%s699_s1 + $0x10] sm:$0xff] (!%p140_p9)  ;;  %v523_v3 = vmov (!%p140_p9), 0.0|0.0   ;;  %vm524_vm0 = vmmov (!%p140_p9), 0   ;;  %v525_v6 = vmov (!%p140_p9), 0.0  }
   0xe   : > { %143 = sbr.rel (%p140_p9) target bundleno = 275 (0x113), region = 32  ;;  %393 = vmatprep.subr.bf16.mxu0 (!%p140_p9), %v523_v3  ;;  %v394_v4 = vpack.c.bf16 (!%p140_p9), %v178_v1, %v177_v0  ;;  %v180_v5 = vld [vmem:[%s699_s1 + $0x18] sm:$0xff] (!%p140_p9)  ;;  %390 = vmatprep.mubr.msk.f32.mxu0 (!%p140_p9), %vm524_vm0, %v525_v6  ;;  %p161_p10 = scmp.lt.s32.totalorder (!%p140_p9), %s568_s16, 1  ;;  %v181_v8 = vld [vmem:[%s699_s1 + $0x20] sm:$0xff] (!%p140_p9)  ;;  %v182_v9 = vld [vmem:[%s699_s1 + $0x28] sm:$0xff] (!%p140_p9)  ;;  %vm167_vm1 = vcmask (!%p140_p9), 1043456  }
   0xf   : > { %v397_v7 = vpack.c.bf16 (!%p140_p9), %v180_v5, %v179_v2  ;;  %v400_v10 = vpack.c.bf16 (!%p140_p9), %v182_v9, %v181_v8  ;;  %v183_v12 = vld [vmem:[%s699_s1 + $0x30] sm:$0xff] (!%p140_p9)  ;;  %v184_v13 = vld [vmem:[%s699_s1 + $0x38] sm:$0xff] (!%p140_p9)  ;;  %v185_v18 = vld [vmem:[%s699_s1 + $0x40] sm:$0xff] (!%p140_p9)  ;;  %s159_s25 = sand.u32 (!%p140_p9), 1, %s513_s13   ;;  %s338_s28 = sshll.u32 (!%p140_p9), %s568_s16, 4 }
  0x10   : > { %395 = vmatpush3.bf16.msra.mxu0 (!%p140_p9), %v394_v4  ;;  %v403_v16 = vpack.c.bf16 (!%p140_p9), %v184_v13, %v183_v12  ;;  %v186_v19 = vld [vmem:[%s699_s1 + $0x48] sm:$0xff] (!%p140_p9)  ;;  %v187_v23 = vld [vmem:[%s699_s1 + $0x50] sm:$0xff] (!%p140_p9)  ;;  %v188_v24 = vld [vmem:[%s699_s1 + $0x58] sm:$0xff] (!%p140_p9)  ;;  %s160_s29 = scalar_lea.vmem (!%p140_p9), [#allocation2], %s159_s25  ;;  %s656_s6 = scalar_lea.hbm (!%p140_p9), %s701_s3, %s338_s28 }
  0x11   : > { %396 = vmatprep.subr.bf16.mxu0 (!%p140_p9), %v523_v3  ;;  %v406_v21 = vpack.c.bf16 (!%p140_p9), %v186_v19, %v185_v18  ;;  %v409_v26 = vpack.c.bf16 (!%p140_p9), %v188_v24, %v187_v23  ;;  %v189_v27 = vld [vmem:[%s699_s1 + $0x60] sm:$0xff] (!%p140_p9)  ;;  %v190_v28 = vld [vmem:[%s699_s1 + $0x68] sm:$0xff] (!%p140_p9)  ;;  %v191_v31 = vld [vmem:[%s699_s1 + $0x70] sm:$0xff] (!%p140_p9)  ;;  %s278_s30 = sshll.u32 (!%p140_p9), %s160_s29, 4  ;;  %s266_s7 = scalar_lea.sflag (!%p140_p9), [#allocation3], %s159_s25  ;;  %s658_s30 = int_to_ptr.vmem [resolvable:$true] %s278_s30 }
  0x12   : > { %v412_v30 = vpack.c.bf16 (!%p140_p9), %v190_v28, %v189_v27  ;;  %v192_v32 = vld [vmem:[%s699_s1 + $0x78] sm:$0xff] (!%p140_p9)  ;;  %v193_v36 = vld [vmem:[%s700_s2] sm:$0x1] (!%p140_p9)  ;;  %s459_s8 = scalar_lea.vmem (!%p140_p9), %s658_s30, 16 }
  0x13   : > { %v415_v34 = vpack.c.bf16 (!%p140_p9), %v192_v32, %v191_v31  ;;  %p460_p11 = scmp.ne.s32.totalorder (!%p140_p9), %s658_s30, %s459_s8 }
  0x14   : > { %398 = vmatpush3.bf16.msra.mxu0 (!%p140_p9), %v397_v7 }
  0x15   : > { %s162_s5 = scalar_select %p161_p10, %s568_s16, 1  ;;  %399 = vmatprep.subr.bf16.mxu0 %v523_v3 }
  0x16   : > { %p461_p12 = pnand %p460_p11, %p585_p5  ;;  %s526_s16 = smov [#allocation2]  }
  0x17   : > { %s337_s10 = sshll.u32 %s162_s5, 1  ;;  %s463_s9 = sshll.u32 %s526_s16, 4  ;;  %s464_s9 = int_to_ptr.vmem [resolvable:$false] %s463_s9 }
  0x18   : > { %s164_s19 = scalar_lea.vmem %s698_s0, %s337_s10  ;;  %401 = vmatpush3.bf16.msra.mxu0 %v400_v10  ;;  %p462_p13 = pneg %p461_p12 }
  0x19   : > { %v165_v11 = vld [vmem:[%s164_s19] sm:$0x3]  ;;  %402 = vmatprep.subr.bf16.mxu0 %v523_v3  ;;  %s465_s10 = scalar_lea.vmem %s464_s9, 32  ;;  %p466_p0 = scmp.lt.s32.totalorder %s658_s30, %s464_s9 }
  0x1a   : > { %v166_v14 = vunpack.c.l.bf16 %v165_v11  ;;  %p467_p1 = scmp.lt.s32.totalorder %s465_s10, %s459_s8 }
  0x1c   : > { %v168_v15 = vsel %vm167_vm1, %v166_v14, 0.0  ;;  %404 = vmatpush3.bf16.msra.mxu0 %v403_v16  ;;  %p468_p2 = por %p467_p1, %p466_p0 }
  0x1d   : > { %v169_v17 = vrot.slane %v168_v15, 4  ;;  %405 = vmatprep.subr.bf16.mxu0 %v523_v3 }
  0x1e   : > { %p469_p3 = pnand %p468_p2, %p462_p13 }
  0x1f   : > { %v170_v20 = vadd.f32 %v169_v17, %v168_v15 }
  0x20   : > { %407 = vmatpush3.bf16.msra.mxu0 %v406_v21 }
  0x21   : > { %v171_v22 = vrot.slane %v170_v20, 2  ;;  %408 = vmatprep.subr.bf16.mxu0 %v523_v3 }
  0x23   : > { %v172_v25 = vadd.f32 %v171_v22, %v170_v20 }
  0x24   : > { %410 = vmatpush3.bf16.msra.mxu0 %v409_v26 }
  0x25   : > { %v173_v29 = vrot.slane %v172_v25, 1  ;;  %411 = vmatprep.subr.bf16.mxu0 %v523_v3 }
  0x27   : > { %v174_v33 = vadd.f32 %v173_v29, %v172_v25 }
  0x28   : > { %413 = vmatpush3.bf16.msra.mxu0 %v412_v30 }
  0x29   : > { %414 = vmatprep.subr.bf16.mxu0 %v523_v3  ;;  %v176_v35 = vmul.f32 0.25, %v174_v33 }
  0x2c   : > { %416 = vmatpush3.bf16.msra.mxu0 %v415_v34 }
  0x2f   : > { %391 = vmatmul.mubr.f32.vlgmr.msra.gmra.mrb[0].mxu0 %v176_v35 }
 0x102   : > { %v260_v37 = vpop.f32.mrb[0].mxu0 }
 0x103   : > { %v261_v38 = vadd.f32 %v260_v37, %v193_v36  ;;  %v392_v39 = vpop.f32.mrb[1].mxu0 }
 0x105   : > { %264 = vst [vmem:[%s160_s29] sm:$0x1] %v261_v38 }
 0x106   : > { %472 = shalt.err (!%p469_p3)
}
 0x107   : > { %s473_s11 = scalar_lea.hbm %s656_s6, 16  ;;  %s477_s20 = scalar_lea.hbm %s701_s3, 32 }
 0x108   : > { %p474_p4 = scmp.ne.s32.totalorder %s656_s6, %s473_s11  ;;  %p478_p9 = scmp.lt.u32.totalorder %s656_s6, %s701_s3 }
 0x109   : > { %p479_p10 = scmp.lt.u32.totalorder %s477_s20, %s473_s11  ;;  %p481_p12 = scmp.lt.u32.totalorder %s473_s11, %s656_s6 }
 0x10a   : > { %p475_p7 = pnand %p474_p4, %p585_p5 }
 0x10b   : > { %p480_p11 = por %p479_p10, %p478_p9 }
 0x10c   : > { %p476_p8 = pneg %p475_p7 }
 0x10d   : > { %p482_p13 = por %p481_p12, %p480_p11 }
 0x10f   : > { %p483_p0 = pnand %p482_p13, %p476_p8 }
 0x111   : > { %486 = shalt.err (!%p483_p0)
}
 0x112   : > { %417 = dma.vmem_to_hbm [thread:$0]  (%p585_p5), %s658_s30, 16, %s656_s6, %s266_s7  }
 0x113 PF: > { %p423_p1 = scmp.ge.s32.totalorder %s521_s15, 2  ;;  %s290_s26 = sand.u32 1, %s509_s12  }
 0x114   : > { %s291_s27 = scalar_lea.sflag [#allocation3], %s290_s26 }
 0x115   : > { %p420_p2 = pnand %p423_p1, %p589_p6 }
 0x117   : > { %504 = dma.done.wait (!%p420_p2), %s291_s27, 16  }
 0x118   : > { %506 = vsyncadd (!%p420_p2), %s291_s27, 4294967280  ;;  %p13_p3 = scmp.ge.s32.totalorder %s572_s18, 4   ;;  %s704_s12 = smov %s513_s13 }
 0x119   : > { %s705_s13 = smov %s517_s14  ;;  %s706_s14 = smov %s583_s21 }
 0x11a   : > { %s707_s15 = smov %s572_s18  ;;  %15 = sbr.rel (!%p13_p3) target bundleno = 3 (0x3), region = 67 }
 0x121   :  { %295 = vsyncpa [#allocation3], 1 }
 0x122   :  { %297 = vsyncpa [#allocation3 + $0x1], 1 }

</bundles_post_ra>
